<compile_context>
chip_gen: v6e
topology: v6e:2x2x1
jax: 0.10.0
libtpu: 0.0.40
codegen_flags: <defaults>
</compile_context>

<pallas_src>
import jax
import jax.numpy as jnp
from jax.experimental import pallas as pl
from jax.experimental.pallas import tpu as pltpu


def _round_up(n, m):
    return ((n + m - 1) // m) * m


def _vmem_capacity_bytes():
    try:
        return int(pltpu.get_tpu_info().vmem_capacity_bytes)
    except Exception:
        return 64 << 20  # assume the smallest (v7x-sized) VMEM if the query is unavailable


def _vmem_estimate_bytes(tile_b, dp, hp, lp, in_bytes, h_bytes):
    x_blk = 2 * tile_b * dp * in_bytes                                  # double-buffered x tile
    h_blk = 2 * tile_b * hp * h_bytes                                   # double-buffered h tile
    p_blk = 2 * tile_b * lp * 4                                         # double-buffered probs tile
    weights = 2 * ((dp * hp + hp * lp) * in_bytes + (hp + lp) * 4)      # resident W1/W2/b1/b2
    live = tile_b * (2 * hp * 4 + hp * in_bytes + 2 * lp * 4)           # pre/h f32, h lowp, logits/e f32
    return x_blk + h_blk + p_blk + weights + live


def ffnn_kernel(x_ref, w1_ref, b1_ref, w2_ref, b2_ref, h_ref, p_ref):
    # ---- hidden layer: x @ W1 + b1, exact sigmoid (f32 accumulate on the MXU) ----
    pre = jnp.dot(x_ref[...], w1_ref[...], preferred_element_type=jnp.float32) + b1_ref[...]
    h = 1.0 / (1.0 + jnp.exp(-pre))

    # ---- dropout(p=0.2): identity in eval/inference mode ----
    # TODO(synk): training-mode dropout (pltpu.prng_random_bits mask + 1/(1-p) rescale) not emitted.

    h_lo = h.astype(w2_ref.dtype)  # single cast reused for the second MXU pass / bf16 writeback
    h_ref[...] = h_lo if h_ref.dtype == w2_ref.dtype else h.astype(h_ref.dtype)

    # ---- output layer: h @ W2 + b2, exact softmax over labels ----
    # padded label columns carry a -1e30 f32 bias -> exp(logit - max) == 0, so the
    # softmax over the padded width equals the softmax over the real labels.
    logits = jnp.dot(h_lo, w2_ref[...], preferred_element_type=jnp.float32) + b2_ref[...]
    m = jnp.max(logits, axis=-1, keepdims=True)
    e = jnp.exp(logits - m)
    p_ref[...] = (e / jnp.sum(e, axis=-1, keepdims=True)).astype(p_ref.dtype)


def ffnn_classifier(x, w1, b1, w2, b2, *, tile_b=256, use_bf16_matmul=True, h_dtype=None):
    """Returns (hidden_activation, softmax_probs) exactly like FFNNClassifier.forward (eval mode)."""
    B, D = x.shape
    H = w1.shape[1]
    L = w2.shape[1]
    b1 = jnp.asarray(b1, jnp.float32).reshape(1, H)
    b2 = jnp.asarray(b2, jnp.float32).reshape(1, L)

    in_dtype = jnp.bfloat16 if use_bf16_matmul else jnp.float32
    if h_dtype is None:
        h_dtype = in_dtype
    in_bytes = jnp.dtype(in_dtype).itemsize
    h_bytes = jnp.dtype(h_dtype).itemsize

    # Lane-dense padded dims (multiples of 128) for K / hidden / label axes.
    Dp = _round_up(D, 128)
    Hp = _round_up(H, 128)
    Lp = _round_up(L, 128)

    # ---- batch tile sizing ----
    align = 16 if h_bytes == 2 else 8  # keep the block's sublane dim layout-friendly
    tile_b = max(align, (int(tile_b) // align) * align)
    tile_b = min(tile_b, _round_up(B, align))
    if B > align:
        # Ensure >= 2 grid steps so the 'parallel' axis splits across v7x's two TCs
        # and the input/output pipeline actually overlaps.
        tile_b = min(tile_b, max(align, _round_up((B + 1) // 2, align)))

    cap = _vmem_capacity_bytes()
    budget = max(16 << 20, int(0.70 * cap))  # ~45 MiB on v7x, ~90 MiB on v5e/v6e
    while tile_b > align and _vmem_estimate_bytes(tile_b, Dp, Hp, Lp, in_bytes, h_bytes) > budget:
        tile_b = max(align, (tile_b // 2) // align * align)
    Bp = _round_up(B, tile_b)

    est = _vmem_estimate_bytes(tile_b, Dp, Hp, Lp, in_bytes, h_bytes)
    vmem_limit = int(min(max(est + (8 << 20), 32 << 20), int(0.9 * cap)))

    # ---- padding + operand pre-cast (bf16 operands, f32 biases) ----
    xp = jnp.pad(x, ((0, Bp - B), (0, Dp - D))).astype(in_dtype)
    w1p = jnp.pad(w1, ((0, Dp - D), (0, Hp - H))).astype(in_dtype)
    b1p = jnp.pad(b1, ((0, 0), (0, Hp - H)))
    w2p = jnp.pad(w2, ((0, Hp - H), (0, Lp - L))).astype(in_dtype)
    b2p = jnp.pad(b2, ((0, 0), (0, Lp - L)), constant_values=-1e30)  # must stay f32 (finite)

    flops = 2 * Bp * (Dp * Hp + Hp * Lp)
    bytes_accessed = (xp.size * in_bytes + w1p.size * in_bytes + w2p.size * in_bytes
                      + b1p.size * 4 + b2p.size * 4 + Bp * Hp * h_bytes + Bp * Lp * 4)
    cost = pl.CostEstimate(flops=int(flops),
                           transcendentals=int(Bp * (Hp + Lp)),
                           bytes_accessed=int(bytes_accessed))

    h_pad, p_pad = pl.pallas_call(
        ffnn_kernel,
        grid=(Bp // tile_b,),
        out_shape=(
            jax.ShapeDtypeStruct((Bp, Hp), h_dtype),
            jax.ShapeDtypeStruct((Bp, Lp), jnp.float32),
        ),
        in_specs=[
            pl.BlockSpec((tile_b, Dp), lambda i: (i, 0)),   # x  (batch-tiled, pipelined)
            pl.BlockSpec((Dp, Hp), lambda i: (0, 0)),       # W1 (constant block, resident)
            pl.BlockSpec((1, Hp), lambda i: (0, 0)),        # b1
            pl.BlockSpec((Hp, Lp), lambda i: (0, 0)),       # W2
            pl.BlockSpec((1, Lp), lambda i: (0, 0)),        # b2
        ],
        out_specs=(
            pl.BlockSpec((tile_b, Hp), lambda i: (i, 0)),   # hidden activation (pre-dropout)
            pl.BlockSpec((tile_b, Lp), lambda i: (i, 0)),   # softmax probs
        ),
        compiler_params=pltpu.CompilerParams(
            dimension_semantics=("parallel",),
            vmem_limit_bytes=vmem_limit,
        ),
        cost_estimate=cost,
    )(xp, w1p, b1p, w2p, b2p)

    # Strip batch / lane padding; module returns (hidden_activation, probs).
    return h_pad[:B, :H], p_pad[:B, :L]


def init_params(key, input_size, hidden_layer_size, num_labels):
    """Deterministic init mirroring torch.nn.Linear default (U(-1/sqrt(fan_in), +1/sqrt(fan_in)))."""
    k1, k2, k3, k4 = jax.random.split(key, 4)
    lim1 = 1.0 / jnp.sqrt(jnp.float32(input_size))
    lim2 = 1.0 / jnp.sqrt(jnp.float32(hidden_layer_size))
    w1 = jax.random.uniform(k1, (input_size, hidden_layer_size), jnp.float32, -lim1, lim1)
    b1 = jax.random.uniform(k2, (1, hidden_layer_size), jnp.float32, -lim1, lim1)
    w2 = jax.random.uniform(k3, (hidden_layer_size, num_labels), jnp.float32, -lim2, lim2)
    b2 = jax.random.uniform(k4, (1, num_labels), jnp.float32, -lim2, lim2)
    return w1, b1, w2, b2


if __name__ == "__main__":
    key = jax.random.PRNGKey(0)
    kx, kp = jax.random.split(key)

    batch = 24
    input_size = 32
    hidden_layer_size = 64
    num_labels = 16

    x = jax.random.normal(kx, (batch, input_size), jnp.float32)
    w1, b1, w2, b2 = init_params(kp, input_size, hidden_layer_size, num_labels)

    # pure-JAX reference (same math as FFNNClassifier.forward in eval mode)
    h_exp = jax.nn.sigmoid(x @ w1 + b1)
    p_exp = jax.nn.softmax(h_exp @ w2 + b2, axis=1)

    # 1) exact-dtype path: f32 operands, f32 outputs, tile_b=8 -> 3 pipelined batch tiles
    h32, p32 = ffnn_classifier(x, w1, b1, w2, b2, tile_b=8, use_bf16_matmul=False)
    jax.block_until_ready((h32, p32))
    assert h32.shape == (batch, hidden_layer_size)
    assert p32.shape == (batch, num_labels)
    assert jnp.allclose(h32, h_exp, atol=3e-3)
    assert jnp.allclose(p32, p_exp, atol=3e-3)
    assert jnp.allclose(jnp.sum(p32, axis=1), 1.0, atol=1e-3)

    # 2) default fast path: bf16 MXU operands + bf16 hidden writeback (f32 accumulate/softmax)
    hbf, pbf = ffnn_classifier(x, w1, b1, w2, b2)
    jax.block_until_ready((hbf, pbf))
    assert hbf.shape == (batch, hidden_layer_size)
    assert pbf.shape == (batch, num_labels)
    assert jnp.allclose(hbf.astype(jnp.float32), h_exp, atol=3e-2)
    assert jnp.allclose(pbf, p_exp, atol=3e-2)
    assert jnp.allclose(jnp.sum(pbf, axis=1), 1.0, atol=5e-3)

    print("KERNEL_OK")
</pallas_src>

<mosaic_0001>
module attributes {stable_mosaic.version = 11 : i64} {
  func.func @ffnn_kernel(%arg0: i32, %arg1: memref<8x128xf32, #tpu.memory_space<vmem>>, %arg2: memref<128x128xf32, #tpu.memory_space<vmem>>, %arg3: memref<1x128xf32, #tpu.memory_space<vmem>>, %arg4: memref<128x128xf32, #tpu.memory_space<vmem>>, %arg5: memref<1x128xf32, #tpu.memory_space<vmem>>, %arg6: memref<8x128xf32, #tpu.memory_space<vmem>>, %arg7: memref<8x128xf32, #tpu.memory_space<vmem>>) attributes {dimension_semantics = [#tpu.dimension_semantics<parallel>], iteration_bounds = array<i64: 3>, scalar_prefetch = 0 : i64, scratch_operands = 0 : i64, tpu.core_type = #tpu.core_type<tc>, window_params = [{transform_indices = @transform_0, window_bounds = array<i64: 8, 128>}, {pipeline_mode = #tpu.pipeline_mode<synchronous>, transform_indices = @transform_1, window_bounds = array<i64: 128, 128>}, {pipeline_mode = #tpu.pipeline_mode<synchronous>, transform_indices = @transform_2, window_bounds = array<i64: 1, 128>}, {pipeline_mode = #tpu.pipeline_mode<synchronous>, transform_indices = @transform_3, window_bounds = array<i64: 128, 128>}, {pipeline_mode = #tpu.pipeline_mode<synchronous>, transform_indices = @transform_4, window_bounds = array<i64: 1, 128>}, {transform_indices = @transform_5, window_bounds = array<i64: 8, 128>}, {transform_indices = @transform_6, window_bounds = array<i64: 8, 128>}]} {
    %c0 = arith.constant 0 : index
    %c0_0 = arith.constant 0 : index
    %0 = vector.load %arg1[%c0, %c0_0] : memref<8x128xf32, #tpu.memory_space<vmem>>, vector<8x128xf32>
    %c0_1 = arith.constant 0 : index
    %c0_2 = arith.constant 0 : index
    %1 = vector.load %arg2[%c0_1, %c0_2] : memref<128x128xf32, #tpu.memory_space<vmem>>, vector<128x128xf32>
    %cst = arith.constant dense<0.000000e+00> : vector<8x128xf32>
    %2 = tpu.matmul %0, %1, %cst {dimension_numbers = #tpu.dot_dimension_numbers<[1], [0], [0], [1], [0, 0, 1, 1], [], []>} : vector<8x128xf32>, vector<128x128xf32>, vector<8x128xf32> -> vector<8x128xf32>
    %c0_3 = arith.constant 0 : index
    %c0_4 = arith.constant 0 : index
    %3 = vector.load %arg3[%c0_3, %c0_4] : memref<1x128xf32, #tpu.memory_space<vmem>>, vector<1x128xf32>
    %4 = vector.broadcast %3 : vector<1x128xf32> to vector<8x128xf32>
    %5 = arith.addf %2, %4 : vector<8x128xf32>
    %cst_5 = arith.constant 0.000000e+00 : f32
    %6 = vector.broadcast %cst_5 : f32 to vector<8x128xf32>
    %7 = arith.subf %6, %5 : vector<8x128xf32>
    %8 = math.exp %7 : vector<8x128xf32>
    %cst_6 = arith.constant 1.000000e+00 : f32
    %9 = vector.broadcast %cst_6 : f32 to vector<8x128xf32>
    %10 = arith.addf %9, %8 : vector<8x128xf32>
    %cst_7 = arith.constant 1.000000e+00 : f32
    %11 = vector.broadcast %cst_7 : f32 to vector<8x128xf32>
    %12 = arith.divf %11, %10 : vector<8x128xf32>
    %c0_8 = arith.constant 0 : index
    %c0_9 = arith.constant 0 : index
    %13 = vector.load %arg6[%c0_8, %c0_9] : memref<8x128xf32, #tpu.memory_space<vmem>>, vector<8x128xf32>
    tpu.vector_store %arg6[%c0_8, %c0_9], %12 {strides = array<i32>} : memref<8x128xf32, #tpu.memory_space<vmem>>, vector<8x128xf32>,
    %c0_10 = arith.constant 0 : index
    %c0_11 = arith.constant 0 : index
    %14 = vector.load %arg4[%c0_10, %c0_11] : memref<128x128xf32, #tpu.memory_space<vmem>>, vector<128x128xf32>
    %cst_12 = arith.constant dense<0.000000e+00> : vector<8x128xf32>
    %15 = tpu.matmul %12, %14, %cst_12 {dimension_numbers = #tpu.dot_dimension_numbers<[1], [0], [0], [1], [0, 0, 1, 1], [], []>} : vector<8x128xf32>, vector<128x128xf32>, vector<8x128xf32> -> vector<8x128xf32>
    %c0_13 = arith.constant 0 : index
    %c0_14 = arith.constant 0 : index
    %16 = vector.load %arg5[%c0_13, %c0_14] : memref<1x128xf32, #tpu.memory_space<vmem>>, vector<1x128xf32>
    %17 = vector.broadcast %16 : vector<1x128xf32> to vector<8x128xf32>
    %18 = arith.addf %15, %17 : vector<8x128xf32>
    %cst_15 = arith.constant dense<0xFF800000> : vector<8xf32>
    %19 = vector.multi_reduction <maximumf>, %18, %cst_15 [1] : vector<8x128xf32> to vector<8xf32>
    %20 = vector.shape_cast %19 : vector<8xf32> to vector<8x1xf32>
    %21 = vector.broadcast %20 : vector<8x1xf32> to vector<8x128xf32>
    %22 = arith.subf %18, %21 : vector<8x128xf32>
    %23 = math.exp %22 : vector<8x128xf32>
    %cst_16 = arith.constant dense<0.000000e+00> : vector<8xf32>
    %24 = vector.multi_reduction <add>, %23, %cst_16 [1] : vector<8x128xf32> to vector<8xf32>
    %25 = vector.shape_cast %24 : vector<8xf32> to vector<8x1xf32>
    %26 = vector.broadcast %25 : vector<8x1xf32> to vector<8x128xf32>
    %27 = arith.divf %23, %26 : vector<8x128xf32>
    %c0_17 = arith.constant 0 : index
    %c0_18 = arith.constant 0 : index
    %28 = vector.load %arg7[%c0_17, %c0_18] : memref<8x128xf32, #tpu.memory_space<vmem>>, vector<8x128xf32>
    tpu.vector_store %arg7[%c0_17, %c0_18], %27 {strides = array<i32>} : memref<8x128xf32, #tpu.memory_space<vmem>>, vector<8x128xf32>,
    return
  }
  func.func @transform_0(%arg0: i32) -> (i32, i32) {
    %c0_i32 = arith.constant 0 : i32
    %c0_i32_0 = arith.constant 0 : i32
    return %arg0, %c0_i32 : i32, i32
  }
  func.func @transform_1(%arg0: i32) -> (i32, i32) {
    %c0_i32 = arith.constant 0 : i32
    %c0_i32_0 = arith.constant 0 : i32
    %c0_i32_1 = arith.constant 0 : i32
    return %c0_i32, %c0_i32_0 : i32, i32
  }
  func.func @transform_2(%arg0: i32) -> (i32, i32) {
    %c0_i32 = arith.constant 0 : i32
    %c0_i32_0 = arith.constant 0 : i32
    %c0_i32_1 = arith.constant 0 : i32
    return %c0_i32, %c0_i32_0 : i32, i32
  }
  func.func @transform_3(%arg0: i32) -> (i32, i32) {
    %c0_i32 = arith.constant 0 : i32
    %c0_i32_0 = arith.constant 0 : i32
    %c0_i32_1 = arith.constant 0 : i32
    return %c0_i32, %c0_i32_0 : i32, i32
  }
  func.func @transform_4(%arg0: i32) -> (i32, i32) {
    %c0_i32 = arith.constant 0 : i32
    %c0_i32_0 = arith.constant 0 : i32
    %c0_i32_1 = arith.constant 0 : i32
    return %c0_i32, %c0_i32_0 : i32, i32
  }
  func.func @transform_5(%arg0: i32) -> (i32, i32) {
    %c0_i32 = arith.constant 0 : i32
    %c0_i32_0 = arith.constant 0 : i32
    return %arg0, %c0_i32 : i32, i32
  }
  func.func @transform_6(%arg0: i32) -> (i32, i32) {
    %c0_i32 = arith.constant 0 : i32
    %c0_i32_0 = arith.constant 0 : i32
    return %arg0, %c0_i32 : i32, i32
  }
}

</mosaic_0001>

<bundles_post_ra>
// kernel: tpu_custom_call.1
= control target key start
LH: loop header
LB: loop body
LE: loop exit
PB: predicated region body
PF: predicated region fallthrough
CT: control target
= control target key end

     0   :  { %s1327_s0 = inlined_call_operand.hbm [shape: f32[24,128], index: 0, kind: input, shape index: {}]   ;;  %s1328_s1 = inlined_call_operand.hbm [shape: f32[128,128], index: 1, kind: input, shape index: {}]   ;;  %s1329_s2 = inlined_call_operand.vmem [shape: f32[1,128], index: 2, kind: input, shape index: {}]   ;;  %s1330_s3 = inlined_call_operand.hbm [shape: f32[128,128], index: 3, kind: input, shape index: {}]   ;;  %s1331_s4 = inlined_call_operand.vmem [shape: f32[1,128], index: 4, kind: input, shape index: {}]   ;;  %s1332_s5 = inlined_call_operand.hbm [shape: f32[24,128], index: 5, kind: output, shape index: {0}]   ;;  %s1333_s6 = inlined_call_operand.hbm [shape: f32[24,128], index: 6, kind: output, shape index: {1}]  }
   0x1   :  { %1338 = sst [smem:[#allocation15_spill]] %s1328_s1 }
   0x2   :  { %12 = vsyncpa [#allocation3], 0 }
   0x3   :  { %14 = vsyncpa [#allocation3 + $0x1], 0 }
   0x4   :  { %15 = vsyncpa [#allocation6], 0 }
   0x5   :  { %16 = vsyncpa [#allocation4], 0 }
   0x6   :  { %18 = vsyncpa [#allocation4 + $0x1], 0 }
   0x7   :  { %19 = vsyncpa [#allocation10], 0 }
   0x8   :  { %21 = vsyncpa [#allocation10 + $0x1], 0  ;;  %s1097_s21 = smov 0   ;;  %s1099_s22 = smov 0  }
   0x9   :  { %s1101_s23 = smov 0   ;;  %s1103_s24 = smov 0  }
   0xa LB: > { %s1118_s25 = sadd.s32 4294967295, %s1051_s24   ;;  %s664_s26 = sadd.s32 4294967294, %s1051_s24   ;;  %s1051_s24 = sphi %s1103_s24, %s1356_s24   ;;  %s1047_s23 = sphi %s1101_s23, %s1355_s23   ;;  %s1043_s22 = sphi %s1099_s22, %s1354_s22   ;;  %s1039_s21 = sphi %s1097_s21, %s1353_s21  }
   0xb   : > { %p47_p0 = scmp.ne.s32.totalorder %s1043_s22, %s1039_s21  ;;  %p1334_p1 = scmp.eq.s32.totalorder %s1118_s25, 0 }
   0xc   : > { %p161_p3 = scmp.eq.s32.totalorder %s664_s26, 2  ;;  %p665_p5 = scmp.ge.s32.totalorder %s1051_s24, 1 }
   0xd   : > { %p1127_p4 = por %p1334_p1, %p47_p0  ;;  %p194_p7 = scmp.lt.s32.totalorder %s1051_s24, 4 }
   0xe   : > { %p1132_p6 = por %p161_p3, %p47_p0  ;;  %s1053_s30 = smov [#allocation5]  }
   0xf   : > { %s1339_s27 = scalar_select %p1127_p4, 1, 0 }
  0x10   : > { %s1340_s28 = scalar_select %p1132_p6, 1, 0 }
  0x11   : > { %p1137_p8 = pnand %p665_p5, %p194_p7  ;;  %s206_s7 = sshll.u32 %s1053_s30, 4  ;;  %s207_s7 = int_to_ptr.vmem [resolvable:$true] %s206_s7 }
  0x12   : > { %s1054_s9 = smov [#allocation7]   ;;  %s884_s11 = scalar_lea.vmem %s207_s7, 2048 }
  0x13   : > { %s1341_s29 = scalar_select %p1137_p8, 1, 0 }
  0x14   : > { %p803_p9 = pneg %p1137_p8  ;;  %s222_s10 = sshll.u32 %s1054_s9, 4  ;;  %s223_s10 = int_to_ptr.vmem [resolvable:$true] %s222_s10 }
  0x15   : > { %p885_p12 = scmp.ne.s32.totalorder %s207_s7, %s884_s11  ;;  %p892_p3 = scmp.lt.s32.totalorder %s207_s7, %s207_s7 }
  0x16   : > { %p1145_p10 = pnand %p803_p9, %p1334_p1  ;;  %p893_p5 = scmp.lt.s32.totalorder %s884_s11, %s884_s11 }
  0x18   : > { %p875_p11 = pneg %p1145_p10  ;;  %p894_p7 = por %p893_p5, %p892_p3 }
  0x1a   : > { %p887_p13 = pnand %p885_p12, %p875_p11 }
  0x1c   : > { %p888_p0 = pneg %p887_p13 }
  0x1e   : > { %p895_p9 = pnand %p894_p7, %p888_p0 }
  0x20   : > { %898 = shalt.err (!%p895_p9)
}
  0x21   : > { %s1055_s12 = smov 128   ;;  %s1056_s13 = smov 8  }
  0x22   : > { %s1343_s1 = sld [smem:[#allocation15_spill]]  ;;  %s910_s16 = scalar_lea.vmem %s223_s10, 2048 }
  0x23   : > { %p911_p1 = scmp.ne.s32.totalorder %s223_s10, %s910_s16  ;;  %p918_p2 = scmp.lt.s32.totalorder %s223_s10, %s223_s10 }
  0x24   : > { %p919_p6 = scmp.lt.s32.totalorder %s910_s16, %s910_s16 }
  0x25   : > { %p913_p12 = pnand %p911_p1, %p875_p11 }
  0x26   : > { %p920_p3 = por %p919_p6, %p918_p2 }
  0x27   : > { %p914_p13 = pneg %p913_p12 }
  0x28   : > { %806 = dma.hbm_to_vmem [thread:$0]  (!%p1145_p10), %s1343_s1, 2048, %s207_s7, [#allocation6], %s1055_s12, %s1055_s12, %s1056_s13  }
  0x29   : > { %p921_p0 = pnand %p920_p3, %p914_p13 }
  0x2b   : > { %924 = shalt.err (!%p921_p0)
}
  0x2c   : > { %809 = dma.hbm_to_vmem [thread:$0]  (!%p1145_p10), %s1330_s3, 2048, %s223_s10, [#allocation6], %s1055_s12, %s1055_s12, %s1056_s13  }
  0x2d   : > { %s1168_s19 = sadd.s32 1, %s1051_s24   ;;  %s34_s20 = sadd.s32 1, %s1047_s23 }
  0x2e   : > { %s31_s26 = ssub.s32 %s1051_s24, %s1168_s19  ;;  %p41_p1 = scmp.ne.s32.totalorder %s1047_s23, %s1043_s22 }
  0x2f   : > { %p32_p2 = scmp.eq.s32.totalorder %s31_s26, 0  ;;  %p42_p6 = scmp.eq.s32.totalorder %s1051_s24, 0 }
  0x30   : > { %p1344_p11 = scmp.eq.s32.totalorder %s1118_s25, 2  ;;  %p823_p7 = scmp.lt.s32.totalorder %s1051_s24, 3 }
  0x31   : > { %s1184_s7 = scalar_select %p32_p2, %s1047_s23, %s34_s20  }
  0x32   : > { %p1178_p5 = por %p1344_p11, %p41_p1  ;;  %p43_p9 = por %p42_p6, %p41_p1 }
  0x33   : > { %s239_s8 = sand.u32 1, %s1047_s23   ;;  %s670_s10 = sshll.u32 %s1051_s24, 7 }
  0x34   : > { %s1345_s30 = scalar_select %p1178_p5, 1, 0 }
  0x35   : > { %s669_s9 = sshll.u32 %s239_s8, 3  ;;  %s1191_s13 = scalar_lea.hbm %s1327_s0, %s670_s10 }
  0x36   : > { %s243_s14 = scalar_lea.vmem [#allocation2], %s669_s9  ;;  %p1193_p10 = pnand %p823_p7, %p43_p9 }
  0x37   : > { %s250_s15 = sshll.u32 %s243_s14, 4  ;;  %s240_s17 = scalar_lea.sflag [#allocation3], %s239_s8  ;;  %s251_s15 = int_to_ptr.vmem [resolvable:$true] %s250_s15 }
  0x38   : > { %s925_s18 = scalar_lea.hbm %s1191_s13, 128  ;;  %p927_p13 = pneg %p1193_p10 }
  0x39   : > { %p926_p12 = scmp.ne.s32.totalorder %s1191_s13, %s925_s18  ;;  %s930_s10 = scalar_lea.hbm %s1327_s0, 384 }
  0x3a   : > { %p931_p1 = scmp.lt.s32.totalorder %s1191_s13, %s1327_s0  ;;  %p932_p2 = scmp.lt.s32.totalorder %s930_s10, %s925_s18 }
  0x3b   : > { %p928_p3 = pnand %p927_p13, %p926_p12 }
  0x3c   : > { %p933_p6 = por %p932_p2, %p931_p1 }
  0x3d   : > { %p929_p0 = pneg %p928_p3 }
  0x3f   : > { %p934_p11 = pnand %p933_p6, %p929_p0 }
  0x41   : > { %937 = shalt.err (!%p934_p11)
}
  0x42   : > { %s938_s12 = scalar_lea.vmem %s251_s15, 128  ;;  %s1057_s8 = smov [#allocation2]  }
  0x43   : > { %p939_p7 = scmp.ne.s32.totalorder %s251_s15, %s938_s12  ;;  %s943_s14 = sshll.u32 %s1057_s8, 4  ;;  %s944_s14 = int_to_ptr.vmem [resolvable:$false] %s943_s14 }
  0x44   : > { %s945_s1 = scalar_lea.vmem %s944_s14, 256  ;;  %p946_p12 = scmp.lt.s32.totalorder %s251_s15, %s944_s14 }
  0x45   : > { %p941_p9 = pnand %p939_p7, %p927_p13  ;;  %p947_p3 = scmp.lt.s32.totalorder %s945_s1, %s938_s12 }
  0x47   : > { %p942_p5 = pneg %p941_p9  ;;  %p948_p4 = por %p947_p3, %p946_p12 }
  0x49   : > { %p949_p8 = pnand %p948_p4, %p942_p5 }
  0x4b   : > { %952 = shalt.err (!%p949_p8)
}
  0x4c   : > { %813 = dma.hbm_to_vmem [thread:$0]  (!%p1193_p10), %s1191_s13, 128, %s251_s15, %s240_s17  }
  0x4d   : > { %p1347_p0 = scmp.ne.s32.totalorder %s1341_s29, 0 }
  0x4e   : > { %s1214_s18 = sand.u32 (!%p1347_p0), 1, %s1043_s22   ;;  %p1348_p4 = scmp.ne.s32.totalorder (!%p1347_p0), %s1339_s27, 0 }
  0x4f   : > { %259 = sbr.rel (%p1347_p0) target bundleno = 869 (0x365), region = 40  ;;  %s1217_s20 = sshll.u32 (!%p1347_p0), %s1214_s18, 3 }
  0x50   : > { %s262_s1 = scalar_lea.sflag (!%p1347_p0), [#allocation3], %s1214_s18  ;;  %s265_s26 = scalar_lea.vmem (!%p1347_p0), [#allocation2], %s1217_s20 }
  0x54   : > { %1022 = dma.done.wait (%p1348_p4), %s262_s1, 128  }
  0x55   : > { %1024 = vsyncadd (%p1348_p4), %s262_s1, 4294967168  ;;  %p1349_p8 = scmp.eq.s32.totalorder %s1118_s25, 0 }
  0x57   : > { %1026 = dma.done.wait (%p1349_p8), [#allocation6], 4096   ;;  %p1350_p5 = pmov %p1349_p8 }
  0x58   : > { %v1058_v0 = vmov 0.0   ;;  %vm1059_vm0 = vmmov 0   ;;  %v323_v1 = vld [vmem:[#allocation5 + $0x78] sm:$0xff]  ;;  %v322_v2 = vld [vmem:[#allocation5 + $0x70] sm:$0xff]  ;;  %v321_v3 = vld [vmem:[#allocation5 + $0x68] sm:$0xff]  ;;  %s299_s13 = scalar_lea.vmem [#allocation8], %s1217_s20 }
  0x59   : > { %1028 = vsyncadd (%p1350_p5), [#allocation6], 4294963200  ;;  %719 = vmatprep.subr.mxu0 %v1058_v0  ;;  %751 = vmatprep.mubr.msk.f32.mxu0 %vm1059_vm0, %v1058_v0  ;;  %v320_v4 = vld [vmem:[#allocation5 + $0x60] sm:$0xff]  ;;  %v319_v5 = vld [vmem:[#allocation5 + $0x58] sm:$0xff]  ;;  %s681_s17 = sshll.u32 %s1118_s25, 7  ;;  %s530_s12 = sshll.u32 %s299_s13, 4  ;;  %s531_s12 = int_to_ptr.vmem [resolvable:$true] %s530_s12 }
  0x5a   : > { %754 = vmatprep.subr.mxu1 %v1058_v0  ;;  %786 = vmatprep.mubr.msk.f32.mxu1 %vm1059_vm0, %v1058_v0  ;;  %v318_v6 = vld [vmem:[#allocation5 + $0x50] sm:$0xff]  ;;  %v317_v7 = vld [vmem:[#allocation5 + $0x48] sm:$0xff]  ;;  %v316_v8 = vld [vmem:[#allocation5 + $0x40] sm:$0xff]  ;;  %s528_s9 = scalar_lea.hbm %s1332_s5, %s681_s17  ;;  %s512_s8 = scalar_lea.sflag [#allocation4], %s1214_s18 }
  0x5b   : > { %720 = vmatpush3.msra.mxu0 %v323_v1  ;;  %v315_v9 = vld [vmem:[#allocation5 + $0x38] sm:$0xff]  ;;  %v314_v10 = vld [vmem:[#allocation5 + $0x30] sm:$0xff]  ;;  %v313_v11 = vld [vmem:[#allocation5 + $0x28] sm:$0xff]  ;;  %s953_s14 = scalar_lea.vmem %s531_s12, 128  ;;  %p1351_p13 = scmp.ne.s32.totalorder %s1345_s30, 0 }
  0x5c   : > { %721 = vmatprep.subr.mxu0 %v1058_v0  ;;  %v312_v12 = vld [vmem:[#allocation5 + $0x20] sm:$0xff]  ;;  %v311_v13 = vld [vmem:[#allocation5 + $0x18] sm:$0xff]  ;;  %v310_v14 = vld [vmem:[#allocation5 + $0x10] sm:$0xff]  ;;  %p954_p10 = scmp.ne.s32.totalorder %s531_s12, %s953_s14  ;;  %s1060_s1 = smov [#allocation8]  }
  0x5d   : > { %722 = vmatpush3.msra.mxu0 %v322_v2  ;;  %v309_v15 = vld [vmem:[#allocation5 + $0x8] sm:$0xff]  ;;  %v308_v16 = vld [vmem:[#allocation5] sm:$0xff]  ;;  %v307_v17 = vld [vmem:[%s265_s26] sm:$0xff]  ;;  %s957_s26 = sshll.u32 %s1060_s1, 4  ;;  %s958_s26 = int_to_ptr.vmem [resolvable:$false] %s957_s26 }
  0x5e   : > { %723 = vmatprep.subr.mxu0 %v1058_v0  ;;  %v423_v18 = vld [vmem:[#allocation7 + $0x78] sm:$0xff]  ;;  %v422_v19 = vld [vmem:[#allocation7 + $0x70] sm:$0xff]  ;;  %v421_v20 = vld [vmem:[#allocation7 + $0x68] sm:$0xff]  ;;  %p955_p1 = pnand %p954_p10, %p1351_p13  ;;  %s959_s27 = scalar_lea.vmem %s958_s26, 256 }
  0x5f   : > { %724 = vmatpush3.msra.mxu0 %v321_v3  ;;  %755 = vmatpush3.msra.mxu1 %v423_v18  ;;  %v420_v21 = vld [vmem:[#allocation7 + $0x60] sm:$0xff]  ;;  %v419_v22 = vld [vmem:[#allocation7 + $0x58] sm:$0xff]  ;;  %v418_v23 = vld [vmem:[#allocation7 + $0x50] sm:$0xff]  ;;  %p960_p6 = scmp.lt.s32.totalorder %s531_s12, %s958_s26  ;;  %p961_p11 = scmp.lt.s32.totalorder %s959_s27, %s953_s14 }
  0x60   : > { %725 = vmatprep.subr.mxu0 %v1058_v0  ;;  %756 = vmatprep.subr.mxu1 %v1058_v0  ;;  %v417_v24 = vld [vmem:[#allocation7 + $0x48] sm:$0xff]  ;;  %v416_v25 = vld [vmem:[#allocation7 + $0x40] sm:$0xff]  ;;  %v415_v26 = vld [vmem:[#allocation7 + $0x38] sm:$0xff]  ;;  %p956_p2 = pneg %p955_p1 }
  0x61   : > { %726 = vmatpush3.msra.mxu0 %v320_v4  ;;  %757 = vmatpush3.msra.mxu1 %v422_v19  ;;  %v414_v27 = vld [vmem:[#allocation7 + $0x30] sm:$0xff]  ;;  %v413_v28 = vld [vmem:[#allocation7 + $0x28] sm:$0xff]  ;;  %v412_v29 = vld [vmem:[#allocation7 + $0x20] sm:$0xff]  ;;  %p962_p7 = por %p961_p11, %p960_p6 }
  0x62   : > { %727 = vmatprep.subr.mxu0 %v1058_v0  ;;  %758 = vmatprep.subr.mxu1 %v1058_v0  ;;  %v411_v30 = vld [vmem:[#allocation7 + $0x18] sm:$0xff]  ;;  %v410_v31 = vld [vmem:[#allocation7 + $0x10] sm:$0xff]  ;;  %v409_v32 = vld [vmem:[#allocation7 + $0x8] sm:$0xff] }
  0x63   : > { %728 = vmatpush3.msra.mxu0 %v319_v5  ;;  %759 = vmatpush3.msra.mxu1 %v421_v20  ;;  %v408_v33 = vld [vmem:[#allocation7] sm:$0xff]  ;;  %v677_v34 = vld [vmem:[%s1329_s2] ss:$0 sm:$0xff]  ;;  %p963_p9 = pnand %p962_p7, %p956_p2 }
  0x64   : > { %729 = vmatprep.subr.mxu0 %v1058_v0  ;;  %760 = vmatprep.subr.mxu1 %v1058_v0  ;;  %v678_v43 = vld [vmem:[%s1331_s4] ss:$0 sm:$0xff] }
  0x65   : > { %730 = vmatpush3.msra.mxu0 %v318_v6  ;;  %761 = vmatpush3.msra.mxu1 %v420_v21 }
  0x66   : > { %731 = vmatprep.subr.mxu0 %v1058_v0  ;;  %762 = vmatprep.subr.mxu1 %v1058_v0 }
  0x67   : > { %732 = vmatpush3.msra.mxu0 %v317_v7  ;;  %763 = vmatpush3.msra.mxu1 %v419_v22 }
  0x68   : > { %733 = vmatprep.subr.mxu0 %v1058_v0  ;;  %764 = vmatprep.subr.mxu1 %v1058_v0 }
  0x69   : > { %734 = vmatpush3.msra.mxu0 %v316_v8  ;;  %765 = vmatpush3.msra.mxu1 %v418_v23 }
  0x6a   : > { %735 = vmatprep.subr.mxu0 %v1058_v0  ;;  %766 = vmatprep.subr.mxu1 %v1058_v0 }
  0x6b   : > { %736 = vmatpush3.msra.mxu0 %v315_v9  ;;  %767 = vmatpush3.msra.mxu1 %v417_v24 }
  0x6c   : > { %737 = vmatprep.subr.mxu0 %v1058_v0  ;;  %768 = vmatprep.subr.mxu1 %v1058_v0 }
  0x6d   : > { %738 = vmatpush3.msra.mxu0 %v314_v10  ;;  %769 = vmatpush3.msra.mxu1 %v416_v25 }
  0x6e   : > { %739 = vmatprep.subr.mxu0 %v1058_v0  ;;  %770 = vmatprep.subr.mxu1 %v1058_v0 }
  0x6f   : > { %740 = vmatpush3.msra.mxu0 %v313_v11  ;;  %771 = vmatpush3.msra.mxu1 %v415_v26 }
  0x70   : > { %741 = vmatprep.subr.mxu0 %v1058_v0  ;;  %772 = vmatprep.subr.mxu1 %v1058_v0 }
  0x71   : > { %742 = vmatpush3.msra.mxu0 %v312_v12  ;;  %773 = vmatpush3.msra.mxu1 %v414_v27 }
  0x72   : > { %743 = vmatprep.subr.mxu0 %v1058_v0  ;;  %774 = vmatprep.subr.mxu1 %v1058_v0 }
  0x73   : > { %744 = vmatpush3.msra.mxu0 %v311_v13  ;;  %775 = vmatpush3.msra.mxu1 %v413_v28 }
  0x74   : > { %745 = vmatprep.subr.mxu0 %v1058_v0  ;;  %776 = vmatprep.subr.mxu1 %v1058_v0 }
  0x75   : > { %746 = vmatpush3.msra.mxu0 %v310_v14  ;;  %777 = vmatpush3.msra.mxu1 %v412_v29 }
  0x76   : > { %747 = vmatprep.subr.mxu0 %v1058_v0  ;;  %778 = vmatprep.subr.mxu1 %v1058_v0 }
  0x77   : > { %748 = vmatpush3.msra.mxu0 %v309_v15  ;;  %779 = vmatpush3.msra.mxu1 %v411_v30 }
  0x78   : > { %749 = vmatprep.subr.mxu0 %v1058_v0  ;;  %780 = vmatprep.subr.mxu1 %v1058_v0 }
  0x79   : > { %750 = vmatpush3.msra.mxu0 %v308_v16  ;;  %781 = vmatpush3.msra.mxu1 %v410_v31 }
  0x7a   : > { %752 = vmatmul.mubr.f32.vlgmr.msra.gmra.mxu0 %v307_v17  ;;  %782 = vmatprep.subr.mxu1 %v1058_v0 }
  0x7b   : > { %783 = vmatpush3.msra.mxu1 %v409_v32 }
  0x7c   : > { %784 = vmatprep.subr.mxu1 %v1058_v0 }
  0x7d   : > { %785 = vmatpush3.msra.mxu1 %v408_v33 }
 0x13a   : > { %v397_v35 = vpop.f32.mrf.mxu0 }
 0x13b   : > { %v398_v36 = vadd.f32 %v677_v34, %v397_v35 }
 0x13c   : > { %v753_v37 = vpop.f32.mrf.mxu0 }
 0x13d   : > { %v401_v38 = vsub.f32 0.0, %v398_v36 }
 0x13f   : > { %v402_v39 = vmul.f32 1.442695, %v401_v38 }
 0x141   : > { %865 = vpow2.f32 %v402_v39 }
 0x14e   : > { %v866_v40 = vpop.eup %865 }
 0x14f   : > { %v404_v41 = vadd.f32 1.0, %v866_v40 }
 0x151   : > { %867 = vrcp.f32 %v404_v41 }
 0x15e   : > { %v868_v42 = vpop.eup %867 }
 0x15f   : > { %787 = vmatmul.mubr.f32.vlgmr.msra.gmra.mxu1 %v868_v42  ;;  %407 = vst [vmem:[%s299_s13] sm:$0xff] %v868_v42 }
 0x21f   : > { %v497_v44 = vpop.f32.mrf.mxu1 }
 0x220   : > { %v498_v45 = vadd.f32 %v678_v43, %v497_v44 }
 0x221   : > { %v788_v46 = vpop.f32.mrf.mxu1 }
 0x222   : > { %501 = vmax.xlane.f32.xlu0 %v498_v45 }
 0x2ab   : > { %v502_v47 = vpop.xlane.xlu0 %501 }
 0x2ac   : > { %v503_v48 = vsub.f32 %v498_v45, %v502_v47 }
 0x2ae   : > { %v504_v49 = vmul.f32 1.442695, %v503_v48 }
 0x2b0   : > { %869 = vpow2.f32 %v504_v49 }
 0x2bd   : > { %v870_v50 = vpop.eup %869 }
 0x2be   : > { %506 = vadd.xlane.f32.xlu0 %v870_v50 }
 0x2bf   : > { %966 = shalt.err (!%p963_p9)
}
 0x2c0   : > { %s967_s29 = scalar_lea.hbm %s528_s9, 128  ;;  %s971_s16 = scalar_lea.hbm %s1332_s5, 384 }
 0x2c1   : > { %p968_p12 = scmp.ne.s32.totalorder %s528_s9, %s967_s29  ;;  %p972_p4 = scmp.lt.s32.totalorder %s528_s9, %s1332_s5 }
 0x2c2   : > { %p973_p8 = scmp.lt.s32.totalorder %s971_s16, %s967_s29 }
 0x2c3   : > { %p969_p3 = pnand %p968_p12, %p1351_p13 }
 0x2c4   : > { %p974_p5 = por %p973_p8, %p972_p4 }
 0x2c5   : > { %p970_p0 = pneg %p969_p3 }
 0x2c7   : > { %p975_p10 = pnand %p974_p5, %p970_p0 }
 0x2c9   : > { %978 = shalt.err (!%p975_p10)
}
 0x2ca   : > { %799 = dma.vmem_to_hbm [thread:$0]  (%p1351_p13), %s531_s12, 128, %s528_s9, %s512_s8  }
 0x2cb   : > { %s306_s14 = scalar_lea.vmem [#allocation9], %s1217_s20  ;;  %s541_s29 = scalar_lea.hbm %s1333_s6, %s681_s17 }
 0x2cc   : > { %s543_s1 = sshll.u32 %s306_s14, 4  ;;  %s517_s13 = scalar_lea.sflag [#allocation10], %s1214_s18  ;;  %s544_s1 = int_to_ptr.vmem [resolvable:$true] %s543_s1 }
 0x2cd   : > { %s979_s15 = scalar_lea.vmem %s544_s1, 128  ;;  %s1061_s9 = smov [#allocation9]  }
 0x2ce   : > { %p980_p1 = scmp.ne.s32.totalorder %s544_s1, %s979_s15  ;;  %s983_s12 = sshll.u32 %s1061_s9, 4  ;;  %s984_s12 = int_to_ptr.vmem [resolvable:$false] %s983_s12 }
 0x2cf   : > { %s985_s20 = scalar_lea.vmem %s984_s12, 256  ;;  %p986_p11 = scmp.lt.s32.totalorder %s544_s1, %s984_s12 }
 0x2d0   : > { %p981_p2 = pnand %p980_p1, %p1351_p13  ;;  %p987_p7 = scmp.lt.s32.totalorder %s985_s20, %s979_s15 }
 0x2d2   : > { %p982_p6 = pneg %p981_p2  ;;  %p988_p9 = por %p987_p7, %p986_p11 }
 0x2d4   : > { %p989_p12 = pnand %p988_p9, %p982_p6 }
 0x347   : > { %v507_v51 = vpop.xlane.xlu0 %506 }
 0x348   : > { %871 = vrcp.f32 %v507_v51 }
 0x355   : > { %v872_v52 = vpop.eup %871 }
 0x356   : > { %v509_v53 = vmul.f32 %v872_v52, %v870_v50 }
 0x358   : > { %510 = vst [vmem:[%s306_s14] sm:$0xff] %v509_v53 }
 0x359   : > { %992 = shalt.err (!%p989_p12)
}
 0x35a   : > { %s993_s25 = scalar_lea.hbm %s541_s29, 128  ;;  %s997_s8 = scalar_lea.hbm %s1333_s6, 384 }
 0x35b   : > { %p994_p3 = scmp.ne.s32.totalorder %s541_s29, %s993_s25  ;;  %p998_p8 = scmp.lt.s32.totalorder %s541_s29, %s1333_s6 }
 0x35c   : > { %p999_p5 = scmp.lt.s32.totalorder %s997_s8, %s993_s25 }
 0x35d   : > { %p995_p0 = pnand %p994_p3, %p1351_p13 }
 0x35e   : > { %p1000_p10 = por %p999_p5, %p998_p8 }
 0x35f   : > { %p996_p4 = pneg %p995_p0 }
 0x361   : > { %p1001_p1 = pnand %p1000_p10, %p996_p4 }
 0x363   : > { %1004 = shalt.err (!%p1001_p1)
}
 0x364   : > { %800 = dma.vmem_to_hbm [thread:$0]  (%p1351_p13), %s544_s1, 128, %s541_s29, %s517_s13  }
 0x365 PF: > { %p826_p2 = scmp.ge.s32.totalorder %s1051_s24, 2  ;;  %s555_s11 = sand.u32 1, %s1039_s21  }
 0x366   : > { %p1352_p6 = scmp.ne.s32.totalorder %s1340_s28, 0  ;;  %s556_s14 = scalar_lea.sflag [#allocation4], %s555_s11 }
 0x368   : > { %p815_p11 = pnand %p826_p2, %p1352_p6 }
 0x36a   : > { %p816_p7 = pneg %p815_p11 }
 0x36c   : > { %1030 = dma.done.wait (%p816_p7), %s556_s14, 128  }
 0x36d   : > { %1032 = vsyncadd (%p816_p7), %s556_s14, 4294967168  ;;  %s565_s26 = scalar_lea.sflag [#allocation10], %s555_s11 }
 0x36e   : > { %1034 = dma.done.wait (%p816_p7), %s565_s26, 128  }
 0x36f   : > { %1036 = vsyncadd (%p816_p7), %s565_s26, 4294967168  ;;  %p24_p13 = scmp.ge.s32.totalorder %s1168_s19, 5   ;;  %s1353_s21 = smov %s1043_s22 }
 0x370   : > { %s1354_s22 = smov %s1047_s23  ;;  %s1355_s23 = smov %s1184_s7 }
 0x371   : > { %s1356_s24 = smov %s1168_s19  ;;  %26 = sbr.rel (!%p24_p13) target bundleno = 10 (0xa), region = 110 }
 0x376   :  { %570 = vsyncpa [#allocation3], 1 }
 0x377   :  { %572 = vsyncpa [#allocation3 + $0x1], 1 }
 0x378   :  { %573 = vsyncpa [#allocation6], 1 }
 0x379   :  { %574 = vsyncpa [#allocation4], 1 }
 0x37a   :  { %576 = vsyncpa [#allocation4 + $0x1], 1 }
 0x37b   :  { %577 = vsyncpa [#allocation10], 1 }
 0x37c   :  { %579 = vsyncpa [#allocation10 + $0x1], 1 }

</bundles_post_ra>
